<compile_context>
chip_gen: v5e
topology: v5e:2x2
jax: 0.10.0
libtpu: 0.0.40
codegen_flags: <defaults>
</compile_context>

<pallas_src>
import functools

import jax
import jax.numpy as jnp
from jax.experimental import pallas as pl
from jax.experimental.pallas import tpu as pltpu


def _round_up(x, m):
    return ((x + m - 1) // m) * m


def bnn_kernel(x_ref, w1_ref, b1_ref, w2_ref, b2_ref, o_ref):
    # fc1: (TILE_B, In) @ (In, H_pad) on the MXU, bf16 in / f32 accumulate.
    h = jnp.dot(x_ref[...], w1_ref[...], preferred_element_type=jnp.float32)
    # Bias + ReLU on the VPU (slack slots while MXU is busy).
    h = jnp.maximum(h + b1_ref[...], 0.0)
    # out: (TILE_B, H_pad) @ (H_pad, Out_pad), bf16 in / f32 accumulate.
    y = jnp.dot(h.astype(jnp.bfloat16), w2_ref[...],
                preferred_element_type=jnp.float32)
    y = y + b2_ref[...]
    o_ref[...] = y.astype(o_ref.dtype)


@functools.partial(jax.jit, static_argnames=("tile_b",))
def bnn_forward(x, w1, b1, w2, b2, *, tile_b=512):
    """Fused Linear -> ReLU -> Linear.

    x:  (B, In)   float32
    w1: (In, H)   float32   (transpose of torch fc1.weight)
    b1: (1, H)    float32
    w2: (H, Out)  float32   (transpose of torch out.weight)
    b2: (1, Out)  float32
    returns (B, Out) float32
    """
    B, In = x.shape
    H = w1.shape[1]
    Out = w2.shape[1]

    # Lane-dense padding for hidden / output dims.
    H_pad = _round_up(H, 128)
    Out_pad = _round_up(Out, 128)

    # Batch tiling: pad batch to a multiple of the tile (tile is a multiple
    # of 8 sublanes).
    TILE_B = min(tile_b, _round_up(B, 8))
    B_pad = _round_up(B, TILE_B)
    grid = (B_pad // TILE_B,)

    # Pad + cast inputs. Zero padding is semantics-preserving:
    #   * extra hidden cols: relu(0 + 0) = 0, multiplied by zero rows of w2.
    #   * extra output cols / batch rows are sliced off below.
    x_p = jnp.zeros((B_pad, In), jnp.bfloat16).at[:B, :].set(
        x.astype(jnp.bfloat16))
    w1_p = jnp.zeros((In, H_pad), jnp.bfloat16).at[:, :H].set(
        w1.astype(jnp.bfloat16))
    b1_p = jnp.zeros((1, H_pad), jnp.float32).at[:, :H].set(
        b1.astype(jnp.float32))
    w2_p = jnp.zeros((H_pad, Out_pad), jnp.bfloat16).at[:H, :Out].set(
        w2.astype(jnp.bfloat16))
    b2_p = jnp.zeros((1, Out_pad), jnp.float32).at[:, :Out].set(
        b2.astype(jnp.float32))

    # VMEM budget (double-buffered x/out tiles + resident weights + temps),
    # with headroom, clamped to fit v7x's 64 MiB physical VMEM.
    est = (
        2 * TILE_B * In * 2            # x tile, bf16, double-buffered
        + 2 * TILE_B * Out_pad * 4     # out tile, f32, double-buffered
        + 2 * (In * H_pad + H_pad * Out_pad) * 2   # weights, bf16
        + 2 * (H_pad + Out_pad) * 4                # biases, f32
        + TILE_B * H_pad * 4           # h intermediate
        + TILE_B * Out_pad * 4         # y intermediate
    )
    vmem_limit = int(min(max(2 * est, 8 << 20), 64 << 20))

    out_padded = pl.pallas_call(
        bnn_kernel,
        out_shape=jax.ShapeDtypeStruct((B_pad, Out_pad), jnp.float32),
        grid=grid,
        in_specs=[
            pl.BlockSpec((TILE_B, In), lambda i: (i, 0)),      # x: tiled over batch
            pl.BlockSpec((In, H_pad), lambda i: (0, 0)),       # w1: VMEM-resident
            pl.BlockSpec((1, H_pad), lambda i: (0, 0)),        # b1
            pl.BlockSpec((H_pad, Out_pad), lambda i: (0, 0)),  # w2: VMEM-resident
            pl.BlockSpec((1, Out_pad), lambda i: (0, 0)),      # b2
        ],
        out_specs=pl.BlockSpec((TILE_B, Out_pad), lambda i: (i, 0)),
        compiler_params=pltpu.CompilerParams(
            dimension_semantics=("parallel",),   # megacore shard on v7x
            vmem_limit_bytes=vmem_limit,
        ),
    )(x_p, w1_p, b1_p, w2_p, b2_p)

    return out_padded[:B, :Out]


def init_params(key, input_size, hidden_size, output_size):
    """Deterministic init mimicking torch.nn.Linear defaults
    (uniform(-1/sqrt(fan_in), 1/sqrt(fan_in)))."""
    k1, k2, k3, k4 = jax.random.split(key, 4)
    bound1 = 1.0 / jnp.sqrt(jnp.float32(input_size))
    bound2 = 1.0 / jnp.sqrt(jnp.float32(hidden_size))
    w1 = jax.random.uniform(k1, (input_size, hidden_size), jnp.float32,
                            minval=-bound1, maxval=bound1)
    b1 = jax.random.uniform(k2, (1, hidden_size), jnp.float32,
                            minval=-bound1, maxval=bound1)
    w2 = jax.random.uniform(k3, (hidden_size, output_size), jnp.float32,
                            minval=-bound2, maxval=bound2)
    b2 = jax.random.uniform(k4, (1, output_size), jnp.float32,
                            minval=-bound2, maxval=bound2)
    return w1, b1, w2, b2


if __name__ == "__main__":
    # Small shapes consistent with the module's forward: x is (batch, input_size)
    batch, input_size, hidden_size, output_size = 8, 16, 32, 4

    key = jax.random.PRNGKey(0)
    kx, kp = jax.random.split(key)
    x = jax.random.normal(kx, (batch, input_size), jnp.float32)
    w1, b1, w2, b2 = init_params(kp, input_size, hidden_size, output_size)

    out = bnn_forward(x, w1, b1, w2, b2)
    out = jax.block_until_ready(out)

    # Reference check against plain JAX (f32). Tolerance loosened because the
    # kernel's matmul operands are bf16 (accumulation in f32).
    ref = jnp.maximum(x @ w1 + b1, 0.0) @ w2 + b2
    assert out.shape == (batch, output_size)
    assert jnp.allclose(out, ref, atol=3e-2, rtol=3e-2), (
        f"max abs diff {jnp.max(jnp.abs(out - ref))}")

    print("KERNEL_OK")
</pallas_src>

<mosaic_0001>
module attributes {stable_mosaic.version = 11 : i64} {
  func.func @bnn_kernel(%arg0: i32, %arg1: memref<8x16xbf16, #tpu.memory_space<vmem>>, %arg2: memref<16x128xbf16, #tpu.memory_space<vmem>>, %arg3: memref<1x128xf32, #tpu.memory_space<vmem>>, %arg4: memref<128x128xbf16, #tpu.memory_space<vmem>>, %arg5: memref<1x128xf32, #tpu.memory_space<vmem>>, %arg6: memref<8x128xf32, #tpu.memory_space<vmem>>) attributes {dimension_semantics = [#tpu.dimension_semantics<parallel>], iteration_bounds = array<i64: 1>, scalar_prefetch = 0 : i64, scratch_operands = 0 : i64, tpu.core_type = #tpu.core_type<tc>, window_params = [{transform_indices = @transform_0, window_bounds = array<i64: 8, 16>}, {pipeline_mode = #tpu.pipeline_mode<synchronous>, transform_indices = @transform_1, window_bounds = array<i64: 16, 128>}, {pipeline_mode = #tpu.pipeline_mode<synchronous>, transform_indices = @transform_2, window_bounds = array<i64: 1, 128>}, {pipeline_mode = #tpu.pipeline_mode<synchronous>, transform_indices = @transform_3, window_bounds = array<i64: 128, 128>}, {pipeline_mode = #tpu.pipeline_mode<synchronous>, transform_indices = @transform_4, window_bounds = array<i64: 1, 128>}, {transform_indices = @transform_5, window_bounds = array<i64: 8, 128>}]} {
    %c0 = arith.constant 0 : index
    %c0_0 = arith.constant 0 : index
    %0 = vector.load %arg1[%c0, %c0_0] : memref<8x16xbf16, #tpu.memory_space<vmem>>, vector<8x16xbf16>
    %c0_1 = arith.constant 0 : index
    %c0_2 = arith.constant 0 : index
    %1 = vector.load %arg2[%c0_1, %c0_2] : memref<16x128xbf16, #tpu.memory_space<vmem>>, vector<16x128xbf16>
    %cst = arith.constant dense<0.000000e+00> : vector<8x128xf32>
    %2 = tpu.matmul %0, %1, %cst {dimension_numbers = #tpu.dot_dimension_numbers<[1], [0], [0], [1], [0, 0, 1, 1], [], []>} : vector<8x16xbf16>, vector<16x128xbf16>, vector<8x128xf32> -> vector<8x128xf32>
    %c0_3 = arith.constant 0 : index
    %c0_4 = arith.constant 0 : index
    %3 = vector.load %arg3[%c0_3, %c0_4] : memref<1x128xf32, #tpu.memory_space<vmem>>, vector<1x128xf32>
    %4 = vector.broadcast %3 : vector<1x128xf32> to vector<8x128xf32>
    %5 = arith.addf %2, %4 : vector<8x128xf32>
    %cst_5 = arith.constant 0.000000e+00 : f32
    %6 = vector.broadcast %cst_5 : f32 to vector<8x128xf32>
    %7 = arith.maximumf %5, %6 : vector<8x128xf32>
    %8 = arith.truncf %7 : vector<8x128xf32> to vector<8x128xbf16>
    %c0_6 = arith.constant 0 : index
    %c0_7 = arith.constant 0 : index
    %9 = vector.load %arg4[%c0_6, %c0_7] : memref<128x128xbf16, #tpu.memory_space<vmem>>, vector<128x128xbf16>
    %cst_8 = arith.constant dense<0.000000e+00> : vector<8x128xf32>
    %10 = tpu.matmul %8, %9, %cst_8 {dimension_numbers = #tpu.dot_dimension_numbers<[1], [0], [0], [1], [0, 0, 1, 1], [], []>} : vector<8x128xbf16>, vector<128x128xbf16>, vector<8x128xf32> -> vector<8x128xf32>
    %c0_9 = arith.constant 0 : index
    %c0_10 = arith.constant 0 : index
    %11 = vector.load %arg5[%c0_9, %c0_10] : memref<1x128xf32, #tpu.memory_space<vmem>>, vector<1x128xf32>
    %12 = vector.broadcast %11 : vector<1x128xf32> to vector<8x128xf32>
    %13 = arith.addf %10, %12 : vector<8x128xf32>
    %c0_11 = arith.constant 0 : index
    %c0_12 = arith.constant 0 : index
    %14 = vector.load %arg6[%c0_11, %c0_12] : memref<8x128xf32, #tpu.memory_space<vmem>>, vector<8x128xf32>
    tpu.vector_store %arg6[%c0_11, %c0_12], %13 {strides = array<i32>} : memref<8x128xf32, #tpu.memory_space<vmem>>, vector<8x128xf32>,
    return
  }
  func.func @transform_0(%arg0: i32) -> (i32, i32) {
    %c0_i32 = arith.constant 0 : i32
    %c0_i32_0 = arith.constant 0 : i32
    return %arg0, %c0_i32 : i32, i32
  }
  func.func @transform_1(%arg0: i32) -> (i32, i32) {
    %c0_i32 = arith.constant 0 : i32
    %c0_i32_0 = arith.constant 0 : i32
    %c0_i32_1 = arith.constant 0 : i32
    return %c0_i32, %c0_i32_0 : i32, i32
  }
  func.func @transform_2(%arg0: i32) -> (i32, i32) {
    %c0_i32 = arith.constant 0 : i32
    %c0_i32_0 = arith.constant 0 : i32
    %c0_i32_1 = arith.constant 0 : i32
    return %c0_i32, %c0_i32_0 : i32, i32
  }
  func.func @transform_3(%arg0: i32) -> (i32, i32) {
    %c0_i32 = arith.constant 0 : i32
    %c0_i32_0 = arith.constant 0 : i32
    %c0_i32_1 = arith.constant 0 : i32
    return %c0_i32, %c0_i32_0 : i32, i32
  }
  func.func @transform_4(%arg0: i32) -> (i32, i32) {
    %c0_i32 = arith.constant 0 : i32
    %c0_i32_0 = arith.constant 0 : i32
    %c0_i32_1 = arith.constant 0 : i32
    return %c0_i32, %c0_i32_0 : i32, i32
  }
  func.func @transform_5(%arg0: i32) -> (i32, i32) {
    %c0_i32 = arith.constant 0 : i32
    %c0_i32_0 = arith.constant 0 : i32
    return %arg0, %c0_i32 : i32, i32
  }
}

</mosaic_0001>

<bundles_post_ra>
// kernel: bnn_forward.1
= control target key start
LH: loop header
LB: loop body
LE: loop exit
PB: predicated region body
PF: predicated region fallthrough
CT: control target
= control target key end

     0   :  { %vm34_vm0 = vcmask 130048   ;;  %s256_s1 = inlined_call_operand.vmem [shape: bf16[16,128], index: 1, kind: input, shape index: {}]   ;;  %s257_s0 = inlined_call_operand.vmem [shape: bf16[8,16], index: 0, kind: input, shape index: {}]   ;;  %s258_s3 = inlined_call_operand.vmem [shape: bf16[128,128], index: 3, kind: input, shape index: {}]   ;;  %s259_s2 = inlined_call_operand.vmem [shape: f32[1,128], index: 2, kind: input, shape index: {}]   ;;  %s260_s4 = inlined_call_operand.vmem [shape: f32[1,128], index: 4, kind: input, shape index: {}]   ;;  %s261_s5 = inlined_call_operand.vmem [shape: f32[8,128], index: 5, kind: output, shape index: {}]  }
   0x1   :  { %v176_v0 = vld [vmem:[%s256_s1] sm:$0xff]  ;;  %v184_v1 = vld [vmem:[%s258_s3 + $0x38] sm:$0xff]  ;;  %v183_v3 = vld [vmem:[%s258_s3 + $0x30] sm:$0xff] }
   0x2   :  { %45 = vmatpush.bf16.msra.mxu0 %v176_v0  ;;  %v21_v2 = vld [vmem:[%s257_s0] sm:$0xf]  ;;  %121 = vmatpush.bf16.msra.mxu1 %v184_v1  ;;  %v182_v4 = vld [vmem:[%s258_s3 + $0x28] sm:$0xff]  ;;  %v180_v6 = vld [vmem:[%s258_s3 + $0x18] sm:$0xff] }
   0x3   :  { %v181_v5 = vld [vmem:[%s258_s3 + $0x20] sm:$0xff]  ;;  %v179_v7 = vld [vmem:[%s258_s3 + $0x10] sm:$0xff]  ;;  %v178_v8 = vld [vmem:[%s258_s3 + $0x8] sm:$0xff] }
   0x4   :  { %v177_v9 = vld [vmem:[%s258_s3] sm:$0xff] }
   0x5   :  { %143 = vmatmul.msk.bf16.vlgmr.msra.gmra.mxu0 %vm34_vm0, %v21_v2  ;;  %v185_v10 = vld [vmem:[%s259_s2] ss:$0 sm:$0xff] }
   0x6   :  { %122 = vmatpush.bf16.msra.mxu1 %v183_v3  ;;  %v186_v16 = vld [vmem:[%s260_s4] ss:$0 sm:$0xff] }
   0xa   :  { %123 = vmatpush.bf16.msra.mxu1 %v182_v4 }
   0xe   :  { %124 = vmatpush.bf16.msra.mxu1 %v181_v5 }
  0x12   :  { %125 = vmatpush.bf16.msra.mxu1 %v180_v6 }
  0x16   :  { %126 = vmatpush.bf16.msra.mxu1 %v179_v7 }
  0x1a   :  { %127 = vmatpush.bf16.msra.mxu1 %v178_v8 }
  0x1e   :  { %128 = vmatpush.bf16.msra.mxu1 %v177_v9 }
  0x82   :  { %v47_v11 = vpop.f32.mrf.mxu0 }
  0x83   :  { %v48_v12 = vadd.f32 %v185_v10, %v47_v11 }
  0x85   :  { %v51_v13 = vmax.f32 %v48_v12, 0.0 }
  0x87   :  { %v52_v14 = vpack.c.bf16 %v51_v13, %v51_v13 }
  0x89   :  { %129 = vmatmul.bf16.vlgmr.msra.gmra.mxu1 %v52_v14 }
  0x8a   :  { %v49_v15 = vpop.f32.mrf.mxu0 }
 0x106   :  { %v130_v17 = vpop.f32.mrf.mxu1 }
 0x107   :  { %v131_v18 = vadd.f32 %v186_v16, %v130_v17 }
 0x109   :  { %134 = vst [vmem:[%s261_s5] sm:$0xff] %v131_v18 }
 0x10e   :  { %v132_v19 = vpop.f32.mrf.mxu1 }

</bundles_post_ra>
